<compile_context>
chip_gen: v7x
topology: tpu7x:2x2x1
jax: 0.10.0
libtpu: 0.0.40
codegen_flags: <defaults>
</compile_context>

<pallas_src>
import functools
import math

import jax
import jax.numpy as jnp
from jax.experimental import pallas as pl
from jax.experimental.pallas import tpu as pltpu


def _round_up(n: int, m: int) -> int:
    return ((n + m - 1) // m) * m


def _scale_kernel(x_ref, o_ref, *, mult):
    # Elementwise VPU multiply (memory bound). Compute in f32 for accuracy;
    # the cast is a no-op for f32 inputs and cheap for bf16.
    o_ref[...] = (x_ref[...].astype(jnp.float32) * mult).astype(o_ref.dtype)


def _select_tiling():
    """Per-generation tile bytes + scoped-VMEM limit (best effort, safe default)."""
    tile_bytes = 4 << 20          # 4 MiB tiles: 4x live = 16 MiB, safe everywhere
    vmem_limit = 40 << 20
    try:
        info = pltpu.get_tpu_info()
        vmem = getattr(info, "vmem_capacity_bytes", None)
        if vmem is not None:
            if vmem <= (64 << 20):            # v7x: 64 MiB per TensorCore
                tile_bytes, vmem_limit = 6 << 20, 40 << 20
            else:                             # v5e / v6e: 128 MiB physical VMEM
                tile_bytes, vmem_limit = 8 << 20, 48 << 20
    except Exception:
        pass
    return tile_bytes, vmem_limit


def linear_embedding(x: jax.Array, size: int, scale: float = 1.0,
                     *, min_pallas_bytes: int = 256 << 10) -> jax.Array:
    """Pallas equivalent of LinearEmbedding.forward: (x / size * scale)[..., None]."""
    orig_shape = x.shape
    n = math.prod(orig_shape) if orig_shape else 1
    itemsize = jnp.dtype(x.dtype).itemsize

    def _jnp_fast_path():
        # Fused XLA elementwise op — already at the HBM roofline, no launch
        # overhead, no pad/slice copies. Used for empty / tiny / ragged inputs.
        return (x / size * scale)[..., None]

    if n == 0 or n * itemsize < min_pallas_bytes or n % 128 != 0:
        return _jnp_fast_path()

    # ---- lane-dense, copy-free 2-D slab ------------------------------------
    if n % 512 == 0:
        lane = 512
    elif n % 256 == 0:
        lane = 256
    else:
        lane = 128
    rows = n // lane

    # dtype-native sublane multiple: 8 (f32), 16 (bf16/f16), 32 (int8/fp8)
    sub = max(8, 32 // itemsize)
    if rows < sub:
        return _jnp_fast_path()

    tile_bytes, vmem_limit = _select_tiling()
    tb = max(sub, (tile_bytes // (lane * itemsize)) // sub * sub)
    # Keep >= 2 grid steps when there is enough data (lets v7x's 2 TCs split it).
    tb = min(tb, _round_up(pl.cdiv(rows, 2), sub))
    grid = pl.cdiv(rows, tb)        # last block may be partial; Pallas masks it

    x2d = x.reshape(rows, lane)     # pure metadata reshape, no HBM copy

    mult = float(scale) / float(size)
    kernel = functools.partial(_scale_kernel, mult=mult)
    out2d = pl.pallas_call(
        kernel,
        out_shape=jax.ShapeDtypeStruct((rows, lane), x.dtype),
        grid=(grid,),
        in_specs=[pl.BlockSpec((tb, lane), lambda i: (i, 0))],
        out_specs=pl.BlockSpec((tb, lane), lambda i: (i, 0)),
        compiler_params=pltpu.CompilerParams(
            dimension_semantics=("parallel",),
            vmem_limit_bytes=vmem_limit,
        ),
    )(x2d)

    # unsqueeze(-1) is a pure metadata reshape.
    return out2d.reshape(orig_shape + (1,))


if __name__ == "__main__":
    key = jax.random.PRNGKey(0)
    size = 16
    scale = 2.0

    # 1) small positional-embedding-like input (batch, seq) -> jnp fast path
    B, S = 2, 8
    x = jax.random.uniform(key, (B, S), dtype=jnp.float32) * size
    y = linear_embedding(x, size=size, scale=scale)
    jax.block_until_ready(y)
    y_ref = (x / size * scale)[..., None]
    assert y.shape == (B, S, 1), y.shape
    assert jnp.allclose(y, y_ref, atol=1e-6, rtol=1e-6), "mismatch vs reference (small)"

    # 2) ragged size (not a multiple of 128) -> fused-jnp fallback, no pad/slice
    x2 = jax.random.uniform(jax.random.PRNGKey(0), (4, 383), dtype=jnp.float32) * size
    y2 = linear_embedding(x2, size=size, scale=scale)
    jax.block_until_ready(y2)
    y2_ref = (x2 / size * scale)[..., None]
    assert y2.shape == (4, 383, 1), y2.shape
    assert jnp.allclose(y2, y2_ref, atol=1e-6, rtol=1e-6), "mismatch vs reference (ragged)"

    # 3) force the Pallas path (lane-dense, multi-step grid) on a small slab
    x3 = jax.random.uniform(jax.random.PRNGKey(0), (64, 512), dtype=jnp.float32) * size
    y3 = linear_embedding(x3, size=size, scale=scale, min_pallas_bytes=0)
    jax.block_until_ready(y3)
    y3_ref = (x3 / size * scale)[..., None]
    assert y3.shape == (64, 512, 1), y3.shape
    assert jnp.allclose(y3, y3_ref, atol=1e-6, rtol=1e-6), "mismatch vs reference (pallas)"

    print("KERNEL_OK")
</pallas_src>

<mosaic_0001>
module attributes {stable_mosaic.version = 11 : i64} {
  func.func @_scale_kernel(%arg0: i32, %arg1: memref<32x512xf32, #tpu.memory_space<vmem>>, %arg2: memref<32x512xf32, #tpu.memory_space<vmem>>) attributes {dimension_semantics = [#tpu.dimension_semantics<parallel>], iteration_bounds = array<i64: 2>, scalar_prefetch = 0 : i64, scratch_operands = 0 : i64, tpu.core_type = #tpu.core_type<tc>, window_params = [{transform_indices = @transform_0, window_bounds = array<i64: 32, 512>}, {transform_indices = @transform_1, window_bounds = array<i64: 32, 512>}]} {
    %c0 = arith.constant 0 : index
    %c0_0 = arith.constant 0 : index
    %0 = vector.load %arg1[%c0, %c0_0] : memref<32x512xf32, #tpu.memory_space<vmem>>, vector<32x512xf32>
    %cst = arith.constant 1.250000e-01 : f32
    %1 = vector.broadcast %cst : f32 to vector<32x512xf32>
    %2 = arith.mulf %0, %1 : vector<32x512xf32>
    %c0_1 = arith.constant 0 : index
    %c0_2 = arith.constant 0 : index
    %3 = vector.load %arg2[%c0_1, %c0_2] : memref<32x512xf32, #tpu.memory_space<vmem>>, vector<32x512xf32>
    tpu.vector_store %arg2[%c0_1, %c0_2], %2 {strides = array<i32>} : memref<32x512xf32, #tpu.memory_space<vmem>>, vector<32x512xf32>,
    return
  }
  func.func @transform_0(%arg0: i32) -> (i32, i32) {
    %c0_i32 = arith.constant 0 : i32
    %c0_i32_0 = arith.constant 0 : i32
    return %arg0, %c0_i32 : i32, i32
  }
  func.func @transform_1(%arg0: i32) -> (i32, i32) {
    %c0_i32 = arith.constant 0 : i32
    %c0_i32_0 = arith.constant 0 : i32
    return %arg0, %c0_i32 : i32, i32
  }
}

</mosaic_0001>

<bundles_post_ra>
// kernel: tpu_custom_call.1
= control target key start
LH: loop header
LB: loop body
LE: loop exit
PB: predicated region body
PF: predicated region fallthrough
CT: control target
= control target key end

     0   :  { %6 = vsyncpa [#allocation3], 0  ;;  %s661_s0 = inlined_call_operand.hbm [shape: f32[64,512], index: 0, kind: input, shape index: {}]   ;;  %s662_s1 = inlined_call_operand.hbm [shape: f32[64,512], index: 1, kind: output, shape index: {}]  }
   0x1   :  { %8 = vsyncpa [#allocation3 + $0x1], 0 }
   0x2   :  { %9 = vsyncpa [#allocation4], 0 }
   0x3   :  { %11 = vsyncpa [#allocation4 + $0x1], 0  ;;  %s458_s6 = smov 0   ;;  %s460_s7 = smov 0  }
   0x4   :  { %s462_s8 = smov 0   ;;  %s464_s9 = smov 0  }
   0x5 LB: > { %s479_s10 = sadd.s32 4294967295, %s440_s9   ;;  %s274_s11 = sadd.s32 4294967294, %s440_s9   ;;  %s440_s9 = sphi %s464_s9, %s675_s9   ;;  %s436_s8 = sphi %s462_s8, %s674_s8   ;;  %s432_s7 = sphi %s460_s7, %s673_s7   ;;  %s428_s6 = sphi %s458_s6, %s672_s6  }
   0x6   : > { %s483_s12 = sadd.s32 1, %s440_s9   ;;  %s24_s13 = sadd.s32 1, %s436_s8 }
   0x7   : > { %s21_s14 = ssub.s32 %s440_s9, %s483_s12  ;;  %p31_p0 = scmp.ne.s32.totalorder %s436_s8, %s432_s7 }
   0x8   : > { %p22_p1 = scmp.eq.s32.totalorder %s21_s14, 0  ;;  %p32_p2 = scmp.eq.s32.totalorder %s440_s9, 0 }
   0x9   : > { %p37_p3 = scmp.ne.s32.totalorder %s432_s7, %s428_s6  ;;  %p38_p4 = scmp.eq.s32.totalorder %s479_s10, 0 }
   0xa   : > { %s495_s15 = scalar_select %p22_p1, %s436_s8, %s24_s13  }
   0xb   : > { %p497_p5 = por %p32_p2, %p31_p0  ;;  %p501_p6 = por %p38_p4, %p37_p3 }
   0xc   : > { %p61_p7 = scmp.eq.s32.totalorder %s479_s10, 1  ;;  %p67_p8 = scmp.eq.s32.totalorder %s274_s11, 1 }
   0xd   : > { %p306_p10 = scmp.lt.s32.totalorder %s440_s9, 2  ;;  %s87_s20 = sand.u32 1, %s436_s8  }
   0xe   : > { %p508_p11 = por %p61_p7, %p31_p0  ;;  %p512_p12 = por %p67_p8, %p37_p3 }
   0xf   : > { %s291_s21 = sshll.u32 %s440_s9, 11  ;;  %s277_s22 = sshll.u32 %s87_s20, 7 }
  0x10   : > { %s666_s18 = scalar_select %p508_p11, 1, 0 }
  0x11   : > { %s667_s19 = scalar_select %p512_p12, 1, 0 }
  0x12   : > { %s521_s25 = scalar_lea.hbm %s661_s0, %s291_s21  ;;  %s91_s26 = scalar_lea.vmem [#allocation2], %s277_s22 }
  0x13   : > { %s99_s27 = sshll.u32 %s91_s26, 4  ;;  %p525_p13 = pnand %p306_p10, %p497_p5  ;;  %s529_s27 = int_to_ptr.vmem [resolvable:$true] %s99_s27 }
  0x14   : > { %s531_s29 = scalar_lea.sflag [#allocation3], %s87_s20  ;;  %s344_s30 = scalar_lea.hbm %s521_s25, 2048 }
  0x15   : > { %p345_p0 = scmp.ne.s32.totalorder %s521_s25, %s344_s30  ;;  %p346_p1 = pneg %p525_p13 }
  0x16   : > { %s349_s4 = scalar_lea.hbm %s661_s0, 4096  ;;  %p350_p4 = scmp.lt.u32.totalorder %s521_s25, %s661_s0 }
  0x17   : > { %p347_p2 = pnand %p346_p1, %p345_p0  ;;  %p351_p5 = scmp.lt.u32.totalorder %s349_s4, %s344_s30 }
  0x18   : > { %p353_p8 = scmp.lt.u32.totalorder %s344_s30, %s521_s25 }
  0x19   : > { %p348_p3 = pneg %p347_p2  ;;  %p352_p7 = por %p351_p5, %p350_p4 }
  0x1b   : > { %p354_p10 = por %p353_p8, %p352_p7 }
  0x1d   : > { %p355_p9 = pnand %p354_p10, %p348_p3 }
  0x1f   : > { %358 = shalt.err (!%p355_p9)
}
  0x20   : > { %s359_s13 = scalar_lea.vmem %s529_s27, 2048  ;;  %s442_s14 = smov [#allocation2]  }
  0x21   : > { %p360_p0 = scmp.ne.s32.totalorder %s529_s27, %s359_s13  ;;  %s364_s16 = sshll.u32 %s442_s14, 4  ;;  %s365_s16 = int_to_ptr.vmem [resolvable:$false] %s364_s16 }
  0x22   : > { %s366_s20 = scalar_lea.vmem %s365_s16, 4096  ;;  %p367_p11 = scmp.lt.s32.totalorder %s529_s27, %s365_s16 }
  0x23   : > { %p362_p2 = pnand %p360_p0, %p346_p1  ;;  %p368_p4 = scmp.lt.s32.totalorder %s366_s20, %s359_s13 }
  0x25   : > { %p363_p12 = pneg %p362_p2  ;;  %p369_p5 = por %p368_p4, %p367_p11 }
  0x27   : > { %p370_p7 = pnand %p369_p5, %p363_p12 }
  0x29   : > { %373 = shalt.err (!%p370_p7)
}
  0x2a   : > { %s443_s21 = smov 512   ;;  %s444_s22 = smov 32  }
  0x2b   : > { %301 = dma.hbm_to_vmem [thread:$0]  (!%p525_p13), %s521_s25, 2048, %s529_s27, %s531_s29, %s443_s21, %s443_s21, %s444_s22  }
  0x2c   : > { %p281_p9 = scmp.ge.s32.totalorder %s440_s9, 1  ;;  %p107_p1 = scmp.lt.s32.totalorder %s440_s9, 3 }
  0x2e   : > { %p108_p3 = pnand %p281_p9, %p107_p1 }
  0x2f   : > { %s562_s23 = sand.u32 (!%p108_p3), 1, %s432_s7  }
  0x30   : > { %111 = sbr.rel (%p108_p3) target bundleno = 88 (0x58), region = 24  ;;  %s282_s24 = sshll.u32 (!%p108_p3), %s562_s23, 7 }
  0x31   : > { %s114_s26 = scalar_lea.sflag (!%p108_p3), [#allocation3], %s562_s23  ;;  %s566_s30 = scalar_lea.vmem (!%p108_p3), [#allocation2], %s282_s24 }
  0x37   : > { %419 = dma.done.wait (%p501_p6), %s114_s26, 2048  }
  0x38   : > { %421 = vsyncadd (%p501_p6), %s114_s26, 4294965248  ;;  %v138_v0 = vld [vmem:[%s566_s30] sm:$0xff]  ;;  %v139_v1 = vld [vmem:[%s566_s30 + $0x8] sm:$0xff]  ;;  %s293_s25 = sshll.u32 %s479_s10, 11  ;;  %s576_s27 = scalar_lea.vmem [#allocation5], %s282_s24 }
  0x39   : > { %v140_v2 = vld [vmem:[%s566_s30 + $0x10] sm:$0xff]  ;;  %s201_s17 = sshll.u32 %s576_s27, 4  ;;  %v154_v3 = vmul.f32 0.125, %v138_v0  ;;  %v155_v4 = vmul.f32 0.125, %v139_v1  ;;  %v141_v6 = vld [vmem:[%s566_s30 + $0x18] sm:$0xff]  ;;  %v142_v7 = vld [vmem:[%s566_s30 + $0x20] sm:$0xff]  ;;  %s606_s2 = scalar_lea.hbm %s662_s1, %s293_s25  ;;  %s610_s17 = int_to_ptr.vmem [resolvable:$true] %s201_s17 }
  0x3a   : > { %v156_v5 = vmul.f32 0.125, %v140_v2  ;;  %v143_v8 = vld [vmem:[%s566_s30 + $0x28] sm:$0xff]  ;;  %v157_v9 = vmul.f32 0.125, %v141_v6  ;;  %v158_v10 = vmul.f32 0.125, %v142_v7  ;;  %v144_v12 = vld [vmem:[%s566_s30 + $0x30] sm:$0xff]  ;;  %v145_v13 = vld [vmem:[%s566_s30 + $0x38] sm:$0xff] }
  0x3b   : > { %v159_v11 = vmul.f32 0.125, %v143_v8  ;;  %v146_v14 = vld [vmem:[%s566_s30 + $0x40] sm:$0xff]  ;;  %170 = vst [vmem:[%s576_s27] sm:$0xff] %v154_v3  ;;  %171 = vst [vmem:[%s576_s27 + $0x8] sm:$0xff] %v155_v4  ;;  %v160_v15 = vmul.f32 0.125, %v144_v12  ;;  %v161_v16 = vmul.f32 0.125, %v145_v13  ;;  %v147_v18 = vld [vmem:[%s566_s30 + $0x48] sm:$0xff] }
  0x3c   : > { %172 = vst [vmem:[%s576_s27 + $0x10] sm:$0xff] %v156_v5  ;;  %v162_v17 = vmul.f32 0.125, %v146_v14  ;;  %v148_v19 = vld [vmem:[%s566_s30 + $0x50] sm:$0xff]  ;;  %v149_v20 = vld [vmem:[%s566_s30 + $0x58] sm:$0xff]  ;;  %173 = vst [vmem:[%s576_s27 + $0x18] sm:$0xff] %v157_v9  ;;  %v163_v21 = vmul.f32 0.125, %v147_v18 }
  0x3d   : > { %174 = vst [vmem:[%s576_s27 + $0x20] sm:$0xff] %v158_v10  ;;  %175 = vst [vmem:[%s576_s27 + $0x28] sm:$0xff] %v159_v11  ;;  %v164_v22 = vmul.f32 0.125, %v148_v19  ;;  %v165_v23 = vmul.f32 0.125, %v149_v20  ;;  %v150_v24 = vld [vmem:[%s566_s30 + $0x60] sm:$0xff]  ;;  %v151_v25 = vld [vmem:[%s566_s30 + $0x68] sm:$0xff] }
  0x3e   : > { %v152_v26 = vld [vmem:[%s566_s30 + $0x70] sm:$0xff]  ;;  %176 = vst [vmem:[%s576_s27 + $0x30] sm:$0xff] %v160_v15  ;;  %177 = vst [vmem:[%s576_s27 + $0x38] sm:$0xff] %v161_v16  ;;  %v166_v27 = vmul.f32 0.125, %v150_v24  ;;  %v167_v28 = vmul.f32 0.125, %v151_v25  ;;  %v153_v30 = vld [vmem:[%s566_s30 + $0x78] sm:$0xff] }
  0x3f   : > { %178 = vst [vmem:[%s576_s27 + $0x40] sm:$0xff] %v162_v17  ;;  %v168_v29 = vmul.f32 0.125, %v152_v26  ;;  %179 = vst [vmem:[%s576_s27 + $0x48] sm:$0xff] %v163_v21  ;;  %v169_v31 = vmul.f32 0.125, %v153_v30  ;;  %s187_s10 = scalar_lea.sflag [#allocation4], %s562_s23  ;;  %s374_s3 = scalar_lea.vmem %s610_s17, 2048 }
  0x40   : > { %180 = vst [vmem:[%s576_s27 + $0x50] sm:$0xff] %v164_v22  ;;  %181 = vst [vmem:[%s576_s27 + $0x58] sm:$0xff] %v165_v23  ;;  %p375_p6 = scmp.ne.s32.totalorder %s610_s17, %s374_s3  ;;  %p669_p11 = scmp.ne.s32.totalorder %s666_s18, 0 }
  0x41   : > { %182 = vst [vmem:[%s576_s27 + $0x60] sm:$0xff] %v166_v27  ;;  %183 = vst [vmem:[%s576_s27 + $0x68] sm:$0xff] %v167_v28  ;;  %s445_s4 = smov [#allocation5]  }
  0x42   : > { %184 = vst [vmem:[%s576_s27 + $0x70] sm:$0xff] %v168_v29  ;;  %185 = vst [vmem:[%s576_s27 + $0x78] sm:$0xff] %v169_v31  ;;  %p376_p12 = pnand %p375_p6, %p669_p11  ;;  %s378_s5 = sshll.u32 %s445_s4, 4  ;;  %s379_s5 = int_to_ptr.vmem [resolvable:$false] %s378_s5 }
  0x43   : > { %s380_s11 = scalar_lea.vmem %s379_s5, 4096  ;;  %p381_p8 = scmp.lt.s32.totalorder %s610_s17, %s379_s5 }
  0x44   : > { %p377_p13 = pneg %p376_p12  ;;  %p382_p10 = scmp.lt.s32.totalorder %s380_s11, %s374_s3 }
  0x46   : > { %p383_p0 = por %p382_p10, %p381_p8 }
  0x48   : > { %p384_p2 = pnand %p383_p0, %p377_p13 }
  0x4a   : > { %387 = shalt.err (!%p384_p2)
}
  0x4b   : > { %s388_s13 = scalar_lea.hbm %s606_s2, 2048  ;;  %s392_s20 = scalar_lea.hbm %s662_s1, 4096 }
  0x4c   : > { %p389_p4 = scmp.ne.s32.totalorder %s606_s2, %s388_s13  ;;  %p393_p9 = scmp.lt.u32.totalorder %s606_s2, %s662_s1 }
  0x4d   : > { %p394_p1 = scmp.lt.u32.totalorder %s392_s20, %s388_s13  ;;  %p396_p6 = scmp.lt.u32.totalorder %s388_s13, %s606_s2 }
  0x4e   : > { %p390_p5 = pnand %p389_p4, %p669_p11 }
  0x4f   : > { %p395_p3 = por %p394_p1, %p393_p9 }
  0x50   : > { %p391_p7 = pneg %p390_p5 }
  0x51   : > { %p397_p12 = por %p396_p6, %p395_p3 }
  0x53   : > { %p398_p13 = pnand %p397_p12, %p391_p7 }
  0x55   : > { %401 = shalt.err (!%p398_p13)
}
  0x56   : > { %s446_s24 = smov 512   ;;  %s447_s26 = smov 32  }
  0x57   : > { %296 = dma.vmem_to_hbm [thread:$0]  (%p669_p11), %s610_s17, 2048, %s606_s2, %s187_s10, %s446_s24, %s446_s24, %s447_s26  }
  0x58 PF: > { %s216_s30 = sand.u32 1, %s428_s6   ;;  %p670_p8 = scmp.ne.s32.totalorder %s667_s19, 0 }
  0x59   : > { %p671_p10 = scmp.ge.s32.totalorder %s440_s9, 2  ;;  %s217_s25 = scalar_lea.sflag [#allocation4], %s216_s30 }
  0x5b   : > { %p303_p0 = pnand %p671_p10, %p670_p8 }
  0x5d   : > { %423 = dma.done.wait (!%p303_p0), %s217_s25, 2048  }
  0x5e   : > { %425 = vsyncadd (!%p303_p0), %s217_s25, 4294965248  ;;  %p14_p2 = scmp.ge.s32.totalorder %s483_s12, 4   ;;  %s672_s6 = smov %s432_s7 }
  0x5f   : > { %s673_s7 = smov %s436_s8  ;;  %s674_s8 = smov %s495_s15 }
  0x60   : > { %s675_s9 = smov %s483_s12  ;;  %16 = sbr.rel (!%p14_p2) target bundleno = 5 (0x5), region = 69 }
  0x67   :  { %222 = vsyncpa [#allocation3], 1 }
  0x68   :  { %224 = vsyncpa [#allocation3 + $0x1], 1 }
  0x69   :  { %225 = vsyncpa [#allocation4], 1 }
  0x6a   :  { %227 = vsyncpa [#allocation4 + $0x1], 1 }

</bundles_post_ra>
